<compile_context>
chip_gen: v7x
topology: tpu7x:2x2x1
jax: 0.10.0
libtpu: 0.0.40
codegen_flags: <defaults>
</compile_context>

<pallas_src>
import functools

import jax
import jax.numpy as jnp
from jax import lax
from jax.experimental import pallas as pl
from jax.experimental.pallas import tpu as pltpu


def _round_up(x, m):
    return (x + m - 1) // m * m


def _wx_kernel(x_ref, w_ref, o_ref, *, compute_dtype):
    """One (tb, tc) tile of WX = X @ W^T (full-D reduction per block)."""
    o_ref[...] = lax.dot_general(
        x_ref[...].astype(compute_dtype),
        w_ref[...].astype(compute_dtype),
        (((1,), (1,)), ((), ())),
        preferred_element_type=jnp.float32,
    ).astype(o_ref.dtype)


def _wx_kacc_kernel(x_ref, w_ref, o_ref, acc_ref, *, compute_dtype):
    """K-tiled variant: accumulate partial products over the D axis."""
    ki = pl.program_id(2)

    @pl.when(ki == 0)
    def _():
        acc_ref[...] = jnp.zeros_like(acc_ref)

    acc_ref[...] += lax.dot_general(
        x_ref[...].astype(compute_dtype),
        w_ref[...].astype(compute_dtype),
        (((1,), (1,)), ((), ())),
        preferred_element_type=jnp.float32,
    )

    @pl.when(ki == pl.num_programs(2) - 1)
    def _():
        o_ref[...] = acc_ref[...].astype(o_ref.dtype)


def _default_vmem_limit_bytes():
    """~75% of physical VMEM (96 MiB on v5e/v6e, 48 MiB on v7x), capped."""
    try:
        cap = int(pltpu.get_tpu_info().vmem_capacity_bytes)
    except Exception:
        cap = 64 * 1024 * 1024          # assume the smallest (v7x) part
    return min(cap * 3 // 4, 100 * 1024 * 1024)


def _prep_operand(arr, rows_to, cols_to, compute_dtype, streams):
    """Pad to (rows_to, cols_to); cast in the wrapper only when worth it.

    A wrapper-side cast is a separate XLA pass over the operand (f32 read +
    bf16 write); it only pays off when the kernel streams the operand >= 3
    times, or when a pad copy happens anyway (the cast fuses with it).
    Otherwise the kernel DMAs f32 and casts on the VPU before the MXU.
    """
    pad_r = rows_to - arr.shape[0]
    pad_c = cols_to - arr.shape[1]
    if arr.dtype != compute_dtype and (streams >= 3 or pad_r or pad_c):
        arr = arr.astype(compute_dtype)
    if pad_r or pad_c:
        arr = jnp.pad(arr, ((0, pad_r), (0, pad_c)))
    return arr


def _tiled_wx(inputs, weight, *, compute_dtype, out_dtype,
              block_b, block_c, block_d, vmem_limit_bytes):
    """WX = inputs @ weight.T as a (B, C[, D])-tiled Pallas matmul."""
    B, D = inputs.shape
    C = weight.shape[0]

    block_b = _round_up(max(block_b, 8), 8)
    block_c = _round_up(max(block_c, 128), 128)
    block_d = _round_up(max(block_d, 128), 128)

    tb = min(block_b, _round_up(B, 8))       # big tb => fewer W re-streams
    tc = min(block_c, _round_up(C, 128))
    Bp, Cp = _round_up(B, tb), _round_up(C, tc)
    gb, gc = Bp // tb, Cp // tc

    if D > block_d:                           # tile the reduction axis
        tk, Dp = block_d, _round_up(D, block_d)
    else:
        tk, Dp = D, D                         # full-D block (legal even if unaligned)
    gk = Dp // tk

    streams_w = gb                            # W block index changes every step
    streams_x = gc if gk > 1 else 1           # X re-DMA'd only when its index changes
    x_p = _prep_operand(inputs, Bp, Dp, compute_dtype, streams_x)
    w_p = _prep_operand(weight, Cp, Dp, compute_dtype, streams_w)

    if vmem_limit_bytes is None:
        vmem_limit_bytes = _default_vmem_limit_bytes()

    if gk == 1:
        kernel = functools.partial(_wx_kernel, compute_dtype=compute_dtype)
        grid = (gb, gc)
        in_specs = [pl.BlockSpec((tb, Dp), lambda bi, ci: (bi, 0)),
                    pl.BlockSpec((tc, Dp), lambda bi, ci: (ci, 0))]
        out_specs = pl.BlockSpec((tb, tc), lambda bi, ci: (bi, ci))
        scratch_shapes = []
        # Both axes parallel: on 2-TC parts megacore may split either axis.
        dims = ("parallel", "parallel")
    else:
        kernel = functools.partial(_wx_kacc_kernel, compute_dtype=compute_dtype)
        grid = (gb, gc, gk)
        in_specs = [pl.BlockSpec((tb, tk), lambda bi, ci, ki: (bi, ki)),
                    pl.BlockSpec((tc, tk), lambda bi, ci, ki: (ci, ki))]
        out_specs = pl.BlockSpec((tb, tc), lambda bi, ci, ki: (bi, ci))
        scratch_shapes = [pltpu.VMEM((tb, tc), jnp.float32)]
        dims = ("parallel", "parallel", "arbitrary")

    out_bytes = Bp * Cp * jnp.dtype(out_dtype).itemsize
    cost = pl.CostEstimate(
        flops=2 * Bp * Cp * Dp,
        transcendentals=0,
        bytes_accessed=streams_x * x_p.nbytes + streams_w * w_p.nbytes + out_bytes,
    )

    wx = pl.pallas_call(
        kernel,
        out_shape=jax.ShapeDtypeStruct((Bp, Cp), out_dtype),
        grid_spec=pltpu.PrefetchScalarGridSpec(
            num_scalar_prefetch=0,
            grid=grid,
            in_specs=in_specs,
            out_specs=out_specs,
            scratch_shapes=scratch_shapes,
        ),
        compiler_params=pltpu.CompilerParams(
            dimension_semantics=dims,
            vmem_limit_bytes=vmem_limit_bytes,
        ),
        cost_estimate=cost,
    )(x_p, w_p)

    if Bp != B or Cp != C:
        wx = wx[:B, :C]
    return wx


def resultant_virtual_softmax(inputs, weight, labels, mode=True, scale=1.0, *,
                              compute_dtype=jnp.bfloat16,
                              out_dtype=jnp.float32,
                              block_b=512, block_c=1024, block_d=2048,
                              vmem_limit_bytes=None, concat=True):
    """JAX/Pallas equivalent of ResultantVirtualSoftmax.forward.

    inputs: [B, D], weight: [C, D], labels: [B] int.
    Returns [B, C+1] if mode (or (WX, WX_virt) when concat=False), else [B, C].
    """
    wx = _tiled_wx(inputs, weight, compute_dtype=compute_dtype,
                   out_dtype=out_dtype, block_b=block_b, block_c=block_c,
                   block_d=block_d, vmem_limit_bytes=vmem_limit_bytes)
    if not mode:
        return wx

    # Virtual logit: O(B*D) f32 work on the B gathered class rows (per the
    # performance review).  Forming x - w_yi directly in f32 matches the
    # PyTorch module numerically and avoids bf16 cancellation.
    # NOTE: out-of-range labels are clamped by JAX gather semantics (the
    # PyTorch module would raise) -- documented semantic divergence.
    labels_i = labels.astype(jnp.int32)
    xf = inputs.astype(jnp.float32)
    w_yi = jnp.take(weight, labels_i, axis=0).astype(jnp.float32)     # [B, D]
    w_yi_norm = jnp.sqrt(jnp.sum(w_yi * w_yi, axis=1, keepdims=True))  # [B, 1]
    v = xf - w_yi
    v_norm = jnp.sqrt(jnp.sum(v * v, axis=1, keepdims=True))
    v_unit = v / jnp.maximum(v_norm, 1e-12)        # F.normalize(dim=1), eps=1e-12
    wx_virt = jnp.sum(v_unit * xf, axis=1, keepdims=True) * w_yi_norm * scale
    wx_virt = jnp.clip(wx_virt, 1e-10, 15.0).astype(wx.dtype)

    if concat:
        # Module-faithful [B, C+1].  For large C this is an extra HBM pass
        # over the logits; pass concat=False downstream to skip it.
        return jnp.concatenate([wx, wx_virt], axis=1)
    return wx, wx_virt


def _reference_f32(inputs, weight, labels, mode=True, scale=1.0):
    """Pure-JAX, f32, torch-faithful reference."""
    x = inputs.astype(jnp.float32)
    wT = weight.T.astype(jnp.float32)
    wx = x @ wT
    if not mode:
        return wx
    w_yi = wT[:, labels]                                     # [D, B]
    w_yi_norm = jnp.linalg.norm(w_yi, axis=0)[:, None]       # [B, 1]
    w_virt = x - w_yi.T
    denom = jnp.maximum(jnp.linalg.norm(w_virt, axis=1, keepdims=True), 1e-12)
    w_virt = w_virt / denom * w_yi_norm * scale
    wx_virt = jnp.clip(jnp.sum(w_virt * x, axis=1), 1e-10, 15.0)[:, None]
    return jnp.concatenate([wx, wx_virt], axis=1)


if __name__ == "__main__":
    key = jax.random.PRNGKey(0)
    kx, kw, kl, kx2, kw2, kl2 = jax.random.split(key, 6)

    # --- Aligned shapes, default bf16-MXU / f32-accumulate path -------------
    B, D, C = 16, 128, 256
    inputs = jax.random.normal(kx, (B, D), dtype=jnp.float32)
    bound = (6.0 / (C + D)) ** 0.5                   # xavier_uniform_-like
    weight = jax.random.uniform(kw, (C, D), jnp.float32, -bound, bound)
    labels = jax.random.randint(kl, (B,), 0, C, dtype=jnp.int32)

    ref = _reference_f32(inputs, weight, labels, mode=True, scale=1.0)
    out = jax.block_until_ready(
        resultant_virtual_softmax(inputs, weight, labels, mode=True, scale=1.0))
    assert out.shape == (B, C + 1)
    assert jnp.allclose(out, ref, atol=5e-2, rtol=5e-2)

    # mode=False (plain tiled matmul) and the no-concat tuple path.
    out_wx = jax.block_until_ready(
        resultant_virtual_softmax(inputs, weight, labels, mode=False))
    assert out_wx.shape == (B, C)
    assert jnp.allclose(out_wx, ref[:, :C], atol=5e-2, rtol=5e-2)

    wx_only, virt_only = resultant_virtual_softmax(
        inputs, weight, labels, mode=True, scale=1.0, concat=False)
    jax.block_until_ready((wx_only, virt_only))
    assert wx_only.shape == (B, C) and virt_only.shape == (B, 1)
    assert jnp.allclose(virt_only, ref[:, C:], atol=1e-4, rtol=1e-4)

    # --- Unaligned shapes: exercises B/C/D padding, a (2, 2, 2) grid and the
    # --- K-axis accumulator kernel, with f32 MXU operands. ------------------
    B2, D2, C2, scale2 = 12, 200, 250, 2.0
    inputs2 = jax.random.normal(kx2, (B2, D2), dtype=jnp.float32)
    bound2 = (6.0 / (C2 + D2)) ** 0.5
    weight2 = jax.random.uniform(kw2, (C2, D2), jnp.float32, -bound2, bound2)
    labels2 = jax.random.randint(kl2, (B2,), 0, C2, dtype=jnp.int32)

    ref2 = _reference_f32(inputs2, weight2, labels2, mode=True, scale=scale2)
    out2 = jax.block_until_ready(
        resultant_virtual_softmax(inputs2, weight2, labels2, mode=True,
                                  scale=scale2, compute_dtype=jnp.float32,
                                  block_b=8, block_c=128, block_d=128))
    assert out2.shape == (B2, C2 + 1)
    assert jnp.allclose(out2, ref2, atol=1e-4, rtol=1e-4)

    print("KERNEL_OK")
</pallas_src>

<mosaic_0001>
module attributes {stable_mosaic.version = 11 : i64} {
  func.func @_wx_kernel(%arg0: i32, %arg1: i32, %arg2: memref<16x128xf32, #tpu.memory_space<vmem>>, %arg3: memref<256x128xf32, #tpu.memory_space<vmem>>, %arg4: memref<16x256xf32, #tpu.memory_space<vmem>>) attributes {dimension_semantics = [#tpu.dimension_semantics<parallel>, #tpu.dimension_semantics<parallel>], iteration_bounds = array<i64: 1, 1>, scalar_prefetch = 0 : i64, scratch_operands = 0 : i64, tpu.core_type = #tpu.core_type<tc>, window_params = [{transform_indices = @transform_0, window_bounds = array<i64: 16, 128>}, {transform_indices = @transform_1, window_bounds = array<i64: 256, 128>}, {transform_indices = @transform_2, window_bounds = array<i64: 16, 256>}]} {
    %c0 = arith.constant 0 : index
    %c0_0 = arith.constant 0 : index
    %0 = vector.load %arg2[%c0, %c0_0] : memref<16x128xf32, #tpu.memory_space<vmem>>, vector<16x128xf32>
    %1 = arith.truncf %0 : vector<16x128xf32> to vector<16x128xbf16>
    %c0_1 = arith.constant 0 : index
    %c0_2 = arith.constant 0 : index
    %2 = vector.load %arg3[%c0_1, %c0_2] : memref<256x128xf32, #tpu.memory_space<vmem>>, vector<256x128xf32>
    %3 = arith.truncf %2 : vector<256x128xf32> to vector<256x128xbf16>
    %cst = arith.constant dense<0.000000e+00> : vector<16x256xf32>
    %4 = tpu.matmul %1, %3, %cst {dimension_numbers = #tpu.dot_dimension_numbers<[1], [1], [0], [0], [0, 0, 1, 0], [], []>} : vector<16x128xbf16>, vector<256x128xbf16>, vector<16x256xf32> -> vector<16x256xf32>
    %c0_3 = arith.constant 0 : index
    %c0_4 = arith.constant 0 : index
    %5 = vector.load %arg4[%c0_3, %c0_4] : memref<16x256xf32, #tpu.memory_space<vmem>>, vector<16x256xf32>
    tpu.vector_store %arg4[%c0_3, %c0_4], %4 {strides = array<i32>} : memref<16x256xf32, #tpu.memory_space<vmem>>, vector<16x256xf32>,
    return
  }
  func.func @transform_0(%arg0: i32, %arg1: i32) -> (i32, i32) {
    %c0_i32 = arith.constant 0 : i32
    %c0_i32_0 = arith.constant 0 : i32
    return %arg0, %c0_i32 : i32, i32
  }
  func.func @transform_1(%arg0: i32, %arg1: i32) -> (i32, i32) {
    %c0_i32 = arith.constant 0 : i32
    %c0_i32_0 = arith.constant 0 : i32
    return %arg1, %c0_i32 : i32, i32
  }
  func.func @transform_2(%arg0: i32, %arg1: i32) -> (i32, i32) {
    %c0_i32 = arith.constant 0 : i32
    return %arg0, %arg1 : i32, i32
  }
}

</mosaic_0001>

<bundles_post_ra>
// kernel: tpu_custom_call.1
= control target key start
LH: loop header
LB: loop body
LE: loop exit
PB: predicated region body
PF: predicated region fallthrough
CT: control target
= control target key end

     0   :  { %7 = vsyncpa [#allocation3], 0  ;;  %s312_s0 = inlined_call_operand.hbm [shape: f32[16,128], index: 0, kind: input, shape index: {}]   ;;  %s313_s1 = inlined_call_operand.hbm [shape: f32[256,128], index: 1, kind: input, shape index: {}]   ;;  %s314_s2 = inlined_call_operand.hbm [shape: f32[16,256], index: 2, kind: output, shape index: {}]  }
   0x1   :  { %8 = vsyncpa [#allocation6], 0 }
   0x2   :  { %9 = vsyncpa [#allocation4], 0  ;;  %s254_s9 = smov [#allocation2]   ;;  %s182_s13 = scalar_lea.hbm %s312_s0, 256 }
   0x3   :  { %s15_s10 = sshll.u32 %s254_s9, 4  ;;  %p183_p0 = scmp.ne.s32.totalorder %s312_s0, %s182_s13  ;;  %s16_s10 = int_to_ptr.vmem [resolvable:$true] %s15_s10 }
   0x4   :  { %p186_p1 = scmp.lt.u32.totalorder %s182_s13, %s312_s0 }
   0x6   :  { %p188_p2 = pnand %p186_p1, %p183_p0 }
   0x8   :  { %191 = shalt.err (!%p188_p2)
}
   0x9   :  { %s192_s18 = scalar_lea.vmem %s16_s10, 256  ;;  %p197_p4 = scmp.lt.s32.totalorder %s16_s10, %s16_s10 }
   0xa   :  { %p193_p3 = scmp.ne.s32.totalorder %s16_s10, %s192_s18  ;;  %p198_p5 = scmp.lt.s32.totalorder %s192_s18, %s192_s18 }
   0xc   :  { %p199_p6 = por %p198_p5, %p197_p4 }
   0xe   :  { %p200_p7 = pnand %p199_p6, %p193_p3 }
  0x10   :  { %203 = shalt.err (!%p200_p7)
}
  0x11   :  { %s255_s19 = smov 128   ;;  %s256_s20 = smov 8  }
  0x12   :  { %21 = dma.hbm_to_vmem [thread:$0]  %s312_s0, 256, %s16_s10, [#allocation3], %s255_s19, %s255_s19, %s256_s20  }
  0x13   :  { %s257_s23 = smov [#allocation5]   ;;  %s204_s27 = scalar_lea.hbm %s313_s1, 4096 }
  0x14   :  { %s27_s24 = sshll.u32 %s257_s23, 4  ;;  %p205_p8 = scmp.ne.s32.totalorder %s313_s1, %s204_s27  ;;  %s28_s24 = int_to_ptr.vmem [resolvable:$true] %s27_s24 }
  0x15   :  { %p208_p9 = scmp.lt.u32.totalorder %s204_s27, %s313_s1 }
  0x17   :  { %p210_p10 = pnand %p208_p9, %p205_p8 }
  0x19   :  { %213 = shalt.err (!%p210_p10)
}
  0x1a   :  { %s214_s4 = scalar_lea.vmem %s28_s24, 4096  ;;  %p219_p12 = scmp.lt.s32.totalorder %s28_s24, %s28_s24 }
  0x1b   :  { %p215_p11 = scmp.ne.s32.totalorder %s28_s24, %s214_s4  ;;  %p220_p13 = scmp.lt.s32.totalorder %s214_s4, %s214_s4 }
  0x1d   :  { %p221_p0 = por %p220_p13, %p219_p12 }
  0x1f   :  { %p222_p1 = pnand %p221_p0, %p215_p11 }
  0x21   :  { %225 = shalt.err (!%p222_p1)
}
  0x22   :  { %33 = dma.hbm_to_vmem [thread:$0]  %s313_s1, 4096, %s28_s24, [#allocation6], %s255_s19, %s255_s19, %s256_s20  }
  0x23   :  { %248 = dma.done.wait [#allocation3], 256  }
  0x24   :  { %249 = vsyncadd [#allocation3], 4294967040 }
  0x25   :  { %250 = dma.done.wait [#allocation6], 4096  }
  0x26   :  { %251 = vsyncadd [#allocation6], 4294963200  ;;  %v60_v0 = vld [vmem:[#allocation5 + $0x80] sm:$0xff]  ;;  %v61_v1 = vld [vmem:[#allocation5 + $0x88] sm:$0xff]  ;;  %s258_s1 = smov [#allocation7]  }
  0x27   :  { %v44_v2 = vld [vmem:[#allocation5] sm:$0xff]  ;;  %v84_v3 = vpack.c.bf16 %v61_v1, %v60_v0  ;;  %v45_v4 = vld [vmem:[#allocation5 + $0x8] sm:$0xff]  ;;  %v62_v5 = vld [vmem:[#allocation5 + $0x90] sm:$0xff]  ;;  %s144_s6 = sshll.u32 %s258_s1, 4  ;;  %s145_s6 = int_to_ptr.vmem [resolvable:$true] %s144_s6 }
  0x28   :  { %v63_v6 = vld [vmem:[#allocation5 + $0x98] sm:$0xff]  ;;  %v76_v7 = vpack.c.bf16 %v45_v4, %v44_v2  ;;  %v46_v9 = vld [vmem:[#allocation5 + $0x10] sm:$0xff]  ;;  %v64_v11 = vld [vmem:[#allocation5 + $0xa0] sm:$0xff]  ;;  %s226_s7 = scalar_lea.vmem %s145_s6, 512  ;;  %p231_p3 = scmp.lt.s32.totalorder %s145_s6, %s145_s6 }
  0x29   :  { %v85_v8 = vpack.c.bf16 %v63_v6, %v62_v5  ;;  %157 = vmatprep.subr.bf16.mxu0 %v84_v3  ;;  %v47_v10 = vld [vmem:[#allocation5 + $0x18] sm:$0xff]  ;;  %v65_v12 = vld [vmem:[#allocation5 + $0xa8] sm:$0xff]  ;;  %v41_v15 = vld [vmem:[#allocation2] sm:$0xff]  ;;  %p227_p2 = scmp.ne.s32.totalorder %s145_s6, %s226_s7  ;;  %p232_p4 = scmp.lt.s32.totalorder %s226_s7, %s226_s7 }
  0x2a   :  { %158 = vmatpush3.bf16.xpose.msra.mxu0 %v76_v7  ;;  %v77_v13 = vpack.c.bf16 %v47_v10, %v46_v9  ;;  %v86_v14 = vpack.c.bf16 %v65_v12, %v64_v11  ;;  %v42_v16 = vld [vmem:[#allocation2 + $0x8] sm:$0xff]  ;;  %v48_v18 = vld [vmem:[#allocation5 + $0x20] sm:$0xff]  ;;  %v49_v19 = vld [vmem:[#allocation5 + $0x28] sm:$0xff] }
  0x2b   :  { %159 = vmatprep.subr.bf16.mxu0 %v85_v8  ;;  %v43_v17 = vpack.c.bf16 %v42_v16, %v41_v15  ;;  %v66_v20 = vld [vmem:[#allocation5 + $0xb0] sm:$0xff]  ;;  %v67_v21 = vld [vmem:[#allocation5 + $0xb8] sm:$0xff]  ;;  %v78_v22 = vpack.c.bf16 %v49_v19, %v48_v18  ;;  %v68_v26 = vld [vmem:[#allocation5 + $0xc0] sm:$0xff]  ;;  %p233_p5 = por %p232_p4, %p231_p3 }
  0x2c   :  { %v87_v23 = vpack.c.bf16 %v67_v21, %v66_v20  ;;  %v50_v24 = vld [vmem:[#allocation5 + $0x30] sm:$0xff]  ;;  %v51_v25 = vld [vmem:[#allocation5 + $0x38] sm:$0xff]  ;;  %v69_v27 = vld [vmem:[#allocation5 + $0xc8] sm:$0xff] }
  0x2d   :  { %173 = vmatprep.mubr.bf16.mxu0 %v43_v17  ;;  %v79_v28 = vpack.c.bf16 %v51_v25, %v50_v24  ;;  %v88_v29 = vpack.c.bf16 %v69_v27, %v68_v26  ;;  %v52_v30 = vld [vmem:[#allocation5 + $0x40] sm:$0xff]  ;;  %v53_v31 = vld [vmem:[#allocation5 + $0x48] sm:$0xff]  ;;  %v70_v32 = vld [vmem:[#allocation5 + $0xd0] sm:$0xff]  ;;  %p234_p6 = pnand %p233_p5, %p227_p2 }
  0x2e   :  { %v71_v33 = vld [vmem:[#allocation5 + $0xd8] sm:$0xff]  ;;  %v80_v34 = vpack.c.bf16 %v53_v31, %v52_v30  ;;  %v54_v36 = vld [vmem:[#allocation5 + $0x50] sm:$0xff]  ;;  %v72_v38 = vld [vmem:[#allocation5 + $0xe0] sm:$0xff] }
  0x2f   :  { %v89_v35 = vpack.c.bf16 %v71_v33, %v70_v32  ;;  %v55_v37 = vld [vmem:[#allocation5 + $0x58] sm:$0xff]  ;;  %v73_v39 = vld [vmem:[#allocation5 + $0xe8] sm:$0xff]  ;;  %v56_v42 = vld [vmem:[#allocation5 + $0x60] sm:$0xff] }
  0x30   :  { %v81_v40 = vpack.c.bf16 %v55_v37, %v54_v36  ;;  %v90_v41 = vpack.c.bf16 %v73_v39, %v72_v38  ;;  %v57_v43 = vld [vmem:[#allocation5 + $0x68] sm:$0xff]  ;;  %v74_v44 = vld [vmem:[#allocation5 + $0xf0] sm:$0xff]  ;;  %v75_v45 = vld [vmem:[#allocation5 + $0xf8] sm:$0xff] }
  0x31   :  { %v82_v46 = vpack.c.bf16 %v57_v43, %v56_v42  ;;  %v91_v47 = vpack.c.bf16 %v75_v45, %v74_v44  ;;  %v58_v48 = vld [vmem:[#allocation5 + $0x70] sm:$0xff]  ;;  %v59_v49 = vld [vmem:[#allocation5 + $0x78] sm:$0xff] }
  0x32   :  { %160 = vmatpush3.bf16.xpose.msra.mxu0 %v77_v13  ;;  %v83_v50 = vpack.c.bf16 %v59_v49, %v58_v48 }
  0x33   :  { %161 = vmatprep.subr.bf16.mxu0 %v86_v14 }
  0x3a   :  { %162 = vmatpush3.bf16.xpose.msra.mxu0 %v78_v22 }
  0x3b   :  { %163 = vmatprep.subr.bf16.mxu0 %v87_v23 }
  0x42   :  { %164 = vmatpush3.bf16.xpose.msra.mxu0 %v79_v28 }
  0x43   :  { %165 = vmatprep.subr.bf16.mxu0 %v88_v29 }
  0x4a   :  { %166 = vmatpush3.bf16.xpose.msra.mxu0 %v80_v34 }
  0x4b   :  { %167 = vmatprep.subr.bf16.mxu0 %v89_v35 }
  0x52   :  { %168 = vmatpush3.bf16.xpose.msra.mxu0 %v81_v40 }
  0x53   :  { %169 = vmatprep.subr.bf16.mxu0 %v90_v41 }
  0x5a   :  { %170 = vmatpush3.bf16.xpose.msra.mxu0 %v82_v46 }
  0x5b   :  { %171 = vmatprep.subr.bf16.mxu0 %v91_v47 }
  0x62   :  { %172 = vmatpush3.bf16.xpose.msra.mxu0 %v83_v50 }
  0x69   :  { %174 = vmatmul.mubr.bf16.vlgmr.msra.gmra.mrb[0].mxu0 %v43_v17 }
 0x13c   :  { %v126_v51 = vpop.f32.mrb[0].mxu0 }
 0x13d   :  { %135 = vst [vmem:[#allocation7] sm:$0xff] %v126_v51  ;;  %v128_v52 = vpop.f32.mrb[1].mxu0 }
 0x13e   :  { %136 = vst [vmem:[#allocation7 + $0x8] sm:$0xff] %v128_v52  ;;  %v130_v53 = vpop.f32.mrb[2].mxu0 }
 0x13f   :  { %137 = vst [vmem:[#allocation7 + $0x10] sm:$0xff] %v130_v53  ;;  %v132_v54 = vpop.f32.mrb[3].mxu0 }
 0x140   :  { %138 = vst [vmem:[#allocation7 + $0x18] sm:$0xff] %v132_v54 }
 0x141   :  { %237 = shalt.err (!%p234_p6)
}
 0x142   :  { %s238_s10 = scalar_lea.hbm %s314_s2, 512 }
 0x143   :  { %p239_p7 = scmp.ne.s32.totalorder %s314_s2, %s238_s10  ;;  %p242_p8 = scmp.lt.u32.totalorder %s238_s10, %s314_s2 }
 0x145   :  { %p244_p9 = pnand %p242_p8, %p239_p7 }
 0x147   :  { %247 = shalt.err (!%p244_p9)
}
 0x148   :  { %s259_s15 = smov 256   ;;  %s260_s16 = smov 16  }
 0x149   :  { %150 = dma.vmem_to_hbm [thread:$0]  %s145_s6, 512, %s314_s2, [#allocation4], %s259_s15, %s259_s15, %s260_s16  }
 0x14a   :  { %252 = dma.done.wait [#allocation4], 512  }
 0x14b   :  { %253 = vsyncadd [#allocation4], 4294966784 }
 0x14c   :  { %154 = vsyncpa [#allocation3], 1 }
 0x14d   :  { %155 = vsyncpa [#allocation6], 1 }
 0x14e   :  { %156 = vsyncpa [#allocation4], 1 }

</bundles_post_ra>
